<compile_context>
chip_gen: v7x
topology: tpu7x:2x2x1
jax: 0.10.0
libtpu: 0.0.40
codegen_flags: <defaults>
</compile_context>

<pallas_src>
import functools

import jax
import jax.numpy as jnp
from jax.experimental import pallas as pl
from jax.experimental.pallas import tpu as pltpu


def _round_up(x, m):
    return ((x + m - 1) // m) * m


# ----------------------------------------------------------------------------
# Kernel
# ----------------------------------------------------------------------------
def ppo_fused_kernel(x_ref,
                     w1c_ref, b1c_ref,
                     w2_ref, b2_ref,
                     wh2_ref, whv_ref, bh_ref,
                     out_ref, *, pol_w, val_off):
    x = x_ref[...]                                                   # (TB, D_in)

    # Fused first layer: policy-fc1 and value-fc1 share x -> one MXU pass, one ReLU.
    h_cat = jnp.dot(x, w1c_ref[...], preferred_element_type=jnp.float32) + b1c_ref[...]
    h_cat = jnp.maximum(h_cat, 0.0)                                  # (TB, hcat_w)

    # Packed mode (small h0): both downstream dots consume the full h_cat tile,
    # the other branch's rows of w2 / whv are zero.  Split mode (large h0):
    # lane-aligned slices of the two halves.
    h_pol = h_cat if pol_w == h_cat.shape[1] else h_cat[:, :pol_w]
    h_val = h_cat if val_off == 0 else h_cat[:, val_off:]

    # Policy second layer.
    h2 = jnp.dot(h_pol, w2_ref[...], preferred_element_type=jnp.float32) + b2_ref[...]
    h2 = jnp.maximum(h2, 0.0)                                        # (TB, h1_pad)

    # Combined narrow head: logits in cols [0, out_dim), value in col out_dim.
    out = (jnp.dot(h2, wh2_ref[...], preferred_element_type=jnp.float32)
           + jnp.dot(h_val, whv_ref[...], preferred_element_type=jnp.float32)
           + bh_ref[...])
    out_ref[...] = out.astype(out_ref.dtype)                         # (TB, out_pad)


# ----------------------------------------------------------------------------
# Parameter fusion / padding (done once, not per forward call)
# ----------------------------------------------------------------------------
def prepare_fused_params(params):
    """Fuse fc1/fc1_val, build a narrow combined head, pad exactly with zeros."""
    w1, b1 = params["w1"], params["b1"]
    w2, b2 = params["w2"], params["b2"]
    wa, ba = params["wa"], params["ba"]
    w1v, b1v = params["w1v"], params["b1v"]
    wv, bv = params["wv"], params["bv"]

    d_in, h0 = w1.shape
    h1 = w2.shape[1]
    out_dim = wa.shape[1]

    h1p = _round_up(h1, 128)
    # Narrow output slab: out_dim logits + 1 value lane, padded to a multiple of 8.
    # (Block last-dim equals the full array dim, so no 128-divisibility needed.)
    outp = max(8, _round_up(out_dim + 1, 8))

    if 2 * h0 <= 128:
        # Pack both fc1 branches into a single 128-lane tile.
        hcat_w = 128
        pol_w = hcat_w          # policy dot consumes full h_cat (value rows of w2p are 0)
        val_off = 0             # value dot consumes full h_cat (policy rows of whv are 0)
        v0 = h0                 # value section starts right after the policy section
        w2_rows = hcat_w
        whv_rows = hcat_w
        whv_row0 = h0           # value weights live in the value section's rows
    else:
        h0p = _round_up(h0, 128)
        hcat_w = 2 * h0p
        pol_w = h0p
        val_off = h0p
        v0 = h0p
        w2_rows = h0p
        whv_rows = h0p
        whv_row0 = 0

    # [policy fc1 | value fc1_val]
    w1c = jnp.zeros((d_in, hcat_w), jnp.float32)
    w1c = w1c.at[:, :h0].set(w1).at[:, v0:v0 + h0].set(w1v)
    b1c = jnp.zeros((1, hcat_w), jnp.float32)
    b1c = b1c.at[:, :h0].set(b1).at[:, v0:v0 + h0].set(b1v)

    w2p = jnp.zeros((w2_rows, h1p), jnp.float32).at[:h0, :h1].set(w2)
    b2p = jnp.zeros((1, h1p), jnp.float32).at[:, :h1].set(b2)

    # Combined head: action_head into cols [0, out_dim), value_head into col out_dim.
    wh2 = jnp.zeros((h1p, outp), jnp.float32).at[:h1, :out_dim].set(wa)
    whv = jnp.zeros((whv_rows, outp), jnp.float32)
    whv = whv.at[whv_row0:whv_row0 + h0, out_dim].set(wv[:, 0])
    bh = jnp.zeros((1, outp), jnp.float32)
    bh = bh.at[:, :out_dim].set(ba).at[:, out_dim].set(bv[0, 0])

    fused = dict(w1c=w1c, b1c=b1c, w2=w2p, b2=b2p, wh2=wh2, whv=whv, bh=bh)
    meta = dict(hcat_w=hcat_w, h1_pad=h1p, out_pad=outp, out_dim=out_dim,
                pol_w=pol_w, val_off=val_off)
    return fused, meta


# ----------------------------------------------------------------------------
# Wrapper
# ----------------------------------------------------------------------------
def ppo_forward(x, fused, meta, *, tb=None):
    """PPOAgent forward as one Pallas kernel with a 'parallel' batch grid."""
    B, d_in = x.shape
    out_dim = meta["out_dim"]
    out_pad = meta["out_pad"]
    hcat_w = meta["hcat_w"]
    h1p = meta["h1_pad"]

    # ---- VMEM-aware batch-tile derivation -----------------------------------
    # Bytes that scale with tb: double-buffered x / out tiles + live activations.
    per_row = 4 * (2 * d_in + 2 * out_pad + hcat_w + h1p + out_pad)
    # Weight/bias tiles (constant index_map; conservatively count double buffers).
    fixed = 2 * 4 * (d_in * hcat_w + hcat_w
                     + fused["w2"].shape[0] * h1p + h1p
                     + h1p * out_pad + fused["whv"].shape[0] * out_pad + out_pad)
    try:
        vmem = pltpu.get_tpu_info().vmem_capacity_bytes
    except Exception:
        vmem = 64 << 20          # conservative: v7x per-TC capacity (smallest)
    budget = int(vmem * 0.4)     # headroom for compiler scratch / pipelining

    if B <= 8:
        tb = B                   # single full-batch block (block dim == array dim)
    else:
        tb_cap = max(8, ((budget - fixed) // per_row) // 8 * 8)
        tb = 2048 if tb is None else max(8, (tb // 8) * 8)   # default per perf sweep
        tb = min(tb, tb_cap)
        # Keep >= 2 grid blocks so the "parallel" axis can use both TCs on v7x.
        half = ((B + 1) // 2 + 7) // 8 * 8
        tb = min(tb, half)

    grid = (pl.cdiv(B, tb),)
    est = fixed + tb * per_row
    vmem_limit = int(min(vmem * 3 // 4, max(2 * est, 32 << 20)))

    def const_spec(arr):
        # Constant index_map: DMA'd once, reused across all grid steps.
        # TODO(synk): when hidden dims grow, add pipeline_mode=pl.Buffered(1) here
        # so the large weight tiles are not double-buffered.
        return pl.BlockSpec(arr.shape, lambda i: (0, 0))

    kernel = functools.partial(ppo_fused_kernel,
                               pol_w=meta["pol_w"], val_off=meta["val_off"])

    out = pl.pallas_call(
        kernel,
        out_shape=jax.ShapeDtypeStruct((B, out_pad), jnp.float32),
        grid=grid,
        in_specs=[
            pl.BlockSpec((tb, d_in), lambda i: (i, 0)),   # x: streamed over batch
            const_spec(fused["w1c"]), const_spec(fused["b1c"]),
            const_spec(fused["w2"]), const_spec(fused["b2"]),
            const_spec(fused["wh2"]), const_spec(fused["whv"]), const_spec(fused["bh"]),
        ],
        out_specs=pl.BlockSpec((tb, out_pad), lambda i: (i, 0)),
        compiler_params=pltpu.CompilerParams(
            dimension_semantics=("parallel",),
            vmem_limit_bytes=vmem_limit),
    )(x, fused["w1c"], fused["b1c"], fused["w2"], fused["b2"],
      fused["wh2"], fused["whv"], fused["bh"])

    logits = out[:, :out_dim]
    value = out[:, out_dim:out_dim + 1]
    return logits, value


# ----------------------------------------------------------------------------
# Init + reference
# ----------------------------------------------------------------------------
def init_params(key, input_dim, hidden_dims, output_dim):
    """Deterministic init mimicking nn.Linear's uniform(-1/sqrt(fan_in), 1/sqrt(fan_in))."""
    def linear(key, fan_in, fan_out):
        kw, kb = jax.random.split(key)
        bound = 1.0 / jnp.sqrt(jnp.float32(fan_in))
        w = jax.random.uniform(kw, (fan_in, fan_out), jnp.float32, -bound, bound)
        b = jax.random.uniform(kb, (1, fan_out), jnp.float32, -bound, bound)
        return w, b

    k1, k2, k3, k4, k5 = jax.random.split(key, 5)
    w1, b1 = linear(k1, input_dim, hidden_dims[0])        # fc1
    w2, b2 = linear(k2, hidden_dims[0], hidden_dims[1])   # fc2
    wa, ba = linear(k3, hidden_dims[1], output_dim)       # action_head
    w1v, b1v = linear(k4, input_dim, hidden_dims[0])      # fc1_val
    wv, bv = linear(k5, hidden_dims[0], 1)                # value_head
    return dict(w1=w1, b1=b1, w2=w2, b2=b2, wa=wa, ba=ba,
                w1v=w1v, b1v=b1v, wv=wv, bv=bv)


def ppo_forward_ref(x, p):
    """Pure-JAX reference of the PyTorch forward."""
    x_val = jax.nn.relu(x @ p["w1v"] + p["b1v"])
    value = x_val @ p["wv"] + p["bv"]
    h = jax.nn.relu(x @ p["w1"] + p["b1"])
    h = jax.nn.relu(h @ p["w2"] + p["b2"])
    logits = h @ p["wa"] + p["ba"]
    return logits, value


if __name__ == "__main__":
    input_dim = 16
    hidden_dims = (32, 32)
    output_dim = 8
    batch = 256          # small demo batch; 2 grid blocks after the tb derivation

    key = jax.random.PRNGKey(0)
    k_params, k_x = jax.random.split(key)
    params = init_params(k_params, input_dim, hidden_dims, output_dim)
    x = jax.random.normal(k_x, (batch, input_dim), jnp.float32)

    fused, meta = prepare_fused_params(params)
    logits, value = ppo_forward(x, fused, meta)
    logits, value = jax.block_until_ready((logits, value))

    logits_ref, value_ref = ppo_forward_ref(x, params)
    assert logits.shape == (batch, output_dim)
    assert value.shape == (batch, 1)
    assert jnp.allclose(logits, logits_ref, atol=1e-5), "logits mismatch"
    assert jnp.allclose(value, value_ref, atol=1e-5), "value mismatch"

    print("KERNEL_OK")
</pallas_src>

<mosaic_0001>
module attributes {stable_mosaic.version = 11 : i64} {
  func.func @ppo_fused_kernel(%arg0: i32, %arg1: memref<128x16xf32, #tpu.memory_space<vmem>>, %arg2: memref<16x128xf32, #tpu.memory_space<vmem>>, %arg3: memref<1x128xf32, #tpu.memory_space<vmem>>, %arg4: memref<128x128xf32, #tpu.memory_space<vmem>>, %arg5: memref<1x128xf32, #tpu.memory_space<vmem>>, %arg6: memref<128x16xf32, #tpu.memory_space<vmem>>, %arg7: memref<128x16xf32, #tpu.memory_space<vmem>>, %arg8: memref<1x16xf32, #tpu.memory_space<vmem>>, %arg9: memref<128x16xf32, #tpu.memory_space<vmem>>) attributes {dimension_semantics = [#tpu.dimension_semantics<parallel>], iteration_bounds = array<i64: 2>, scalar_prefetch = 0 : i64, scratch_operands = 0 : i64, tpu.core_type = #tpu.core_type<tc>, window_params = [{transform_indices = @transform_0, window_bounds = array<i64: 128, 16>}, {pipeline_mode = #tpu.pipeline_mode<synchronous>, transform_indices = @transform_1, window_bounds = array<i64: 16, 128>}, {pipeline_mode = #tpu.pipeline_mode<synchronous>, transform_indices = @transform_2, window_bounds = array<i64: 1, 128>}, {pipeline_mode = #tpu.pipeline_mode<synchronous>, transform_indices = @transform_3, window_bounds = array<i64: 128, 128>}, {pipeline_mode = #tpu.pipeline_mode<synchronous>, transform_indices = @transform_4, window_bounds = array<i64: 1, 128>}, {pipeline_mode = #tpu.pipeline_mode<synchronous>, transform_indices = @transform_5, window_bounds = array<i64: 128, 16>}, {pipeline_mode = #tpu.pipeline_mode<synchronous>, transform_indices = @transform_6, window_bounds = array<i64: 128, 16>}, {pipeline_mode = #tpu.pipeline_mode<synchronous>, transform_indices = @transform_7, window_bounds = array<i64: 1, 16>}, {transform_indices = @transform_8, window_bounds = array<i64: 128, 16>}]} {
    %c0 = arith.constant 0 : index
    %c0_0 = arith.constant 0 : index
    %0 = vector.load %arg1[%c0, %c0_0] : memref<128x16xf32, #tpu.memory_space<vmem>>, vector<128x16xf32>
    %c0_1 = arith.constant 0 : index
    %c0_2 = arith.constant 0 : index
    %1 = vector.load %arg2[%c0_1, %c0_2] : memref<16x128xf32, #tpu.memory_space<vmem>>, vector<16x128xf32>
    %cst = arith.constant dense<0.000000e+00> : vector<128x128xf32>
    %2 = tpu.matmul %0, %1, %cst {dimension_numbers = #tpu.dot_dimension_numbers<[1], [0], [0], [1], [0, 0, 1, 1], [], []>} : vector<128x16xf32>, vector<16x128xf32>, vector<128x128xf32> -> vector<128x128xf32>
    %c0_3 = arith.constant 0 : index
    %c0_4 = arith.constant 0 : index
    %3 = vector.load %arg3[%c0_3, %c0_4] : memref<1x128xf32, #tpu.memory_space<vmem>>, vector<1x128xf32>
    %4 = vector.broadcast %3 : vector<1x128xf32> to vector<128x128xf32>
    %5 = arith.addf %2, %4 : vector<128x128xf32>
    %cst_5 = arith.constant 0.000000e+00 : f32
    %6 = vector.broadcast %cst_5 : f32 to vector<128x128xf32>
    %7 = arith.maximumf %5, %6 : vector<128x128xf32>
    %c0_6 = arith.constant 0 : index
    %c0_7 = arith.constant 0 : index
    %8 = vector.load %arg4[%c0_6, %c0_7] : memref<128x128xf32, #tpu.memory_space<vmem>>, vector<128x128xf32>
    %cst_8 = arith.constant dense<0.000000e+00> : vector<128x128xf32>
    %9 = tpu.matmul %7, %8, %cst_8 {dimension_numbers = #tpu.dot_dimension_numbers<[1], [0], [0], [1], [0, 0, 1, 1], [], []>} : vector<128x128xf32>, vector<128x128xf32>, vector<128x128xf32> -> vector<128x128xf32>
    %c0_9 = arith.constant 0 : index
    %c0_10 = arith.constant 0 : index
    %10 = vector.load %arg5[%c0_9, %c0_10] : memref<1x128xf32, #tpu.memory_space<vmem>>, vector<1x128xf32>
    %11 = vector.broadcast %10 : vector<1x128xf32> to vector<128x128xf32>
    %12 = arith.addf %9, %11 : vector<128x128xf32>
    %cst_11 = arith.constant 0.000000e+00 : f32
    %13 = vector.broadcast %cst_11 : f32 to vector<128x128xf32>
    %14 = arith.maximumf %12, %13 : vector<128x128xf32>
    %c0_12 = arith.constant 0 : index
    %c0_13 = arith.constant 0 : index
    %15 = vector.load %arg6[%c0_12, %c0_13] : memref<128x16xf32, #tpu.memory_space<vmem>>, vector<128x16xf32>
    %cst_14 = arith.constant dense<0.000000e+00> : vector<128x16xf32>
    %16 = tpu.matmul %14, %15, %cst_14 {dimension_numbers = #tpu.dot_dimension_numbers<[1], [0], [0], [1], [0, 0, 1, 1], [], []>} : vector<128x128xf32>, vector<128x16xf32>, vector<128x16xf32> -> vector<128x16xf32>
    %c0_15 = arith.constant 0 : index
    %c0_16 = arith.constant 0 : index
    %17 = vector.load %arg7[%c0_15, %c0_16] : memref<128x16xf32, #tpu.memory_space<vmem>>, vector<128x16xf32>
    %cst_17 = arith.constant dense<0.000000e+00> : vector<128x16xf32>
    %18 = tpu.matmul %7, %17, %cst_17 {dimension_numbers = #tpu.dot_dimension_numbers<[1], [0], [0], [1], [0, 0, 1, 1], [], []>} : vector<128x128xf32>, vector<128x16xf32>, vector<128x16xf32> -> vector<128x16xf32>
    %19 = arith.addf %16, %18 : vector<128x16xf32>
    %c0_18 = arith.constant 0 : index
    %c0_19 = arith.constant 0 : index
    %20 = vector.load %arg8[%c0_18, %c0_19] : memref<1x16xf32, #tpu.memory_space<vmem>>, vector<1x16xf32>
    %21 = vector.broadcast %20 : vector<1x16xf32> to vector<128x16xf32>
    %22 = arith.addf %19, %21 : vector<128x16xf32>
    %c0_20 = arith.constant 0 : index
    %c0_21 = arith.constant 0 : index
    %23 = vector.load %arg9[%c0_20, %c0_21] : memref<128x16xf32, #tpu.memory_space<vmem>>, vector<128x16xf32>
    tpu.vector_store %arg9[%c0_20, %c0_21], %22 {strides = array<i32>} : memref<128x16xf32, #tpu.memory_space<vmem>>, vector<128x16xf32>,
    return
  }
  func.func @transform_0(%arg0: i32) -> (i32, i32) {
    %c0_i32 = arith.constant 0 : i32
    %c0_i32_0 = arith.constant 0 : i32
    return %arg0, %c0_i32 : i32, i32
  }
  func.func @transform_1(%arg0: i32) -> (i32, i32) {
    %c0_i32 = arith.constant 0 : i32
    %c0_i32_0 = arith.constant 0 : i32
    %c0_i32_1 = arith.constant 0 : i32
    return %c0_i32, %c0_i32_0 : i32, i32
  }
  func.func @transform_2(%arg0: i32) -> (i32, i32) {
    %c0_i32 = arith.constant 0 : i32
    %c0_i32_0 = arith.constant 0 : i32
    %c0_i32_1 = arith.constant 0 : i32
    return %c0_i32, %c0_i32_0 : i32, i32
  }
  func.func @transform_3(%arg0: i32) -> (i32, i32) {
    %c0_i32 = arith.constant 0 : i32
    %c0_i32_0 = arith.constant 0 : i32
    %c0_i32_1 = arith.constant 0 : i32
    return %c0_i32, %c0_i32_0 : i32, i32
  }
  func.func @transform_4(%arg0: i32) -> (i32, i32) {
    %c0_i32 = arith.constant 0 : i32
    %c0_i32_0 = arith.constant 0 : i32
    %c0_i32_1 = arith.constant 0 : i32
    return %c0_i32, %c0_i32_0 : i32, i32
  }
  func.func @transform_5(%arg0: i32) -> (i32, i32) {
    %c0_i32 = arith.constant 0 : i32
    %c0_i32_0 = arith.constant 0 : i32
    %c0_i32_1 = arith.constant 0 : i32
    return %c0_i32, %c0_i32_0 : i32, i32
  }
  func.func @transform_6(%arg0: i32) -> (i32, i32) {
    %c0_i32 = arith.constant 0 : i32
    %c0_i32_0 = arith.constant 0 : i32
    %c0_i32_1 = arith.constant 0 : i32
    return %c0_i32, %c0_i32_0 : i32, i32
  }
  func.func @transform_7(%arg0: i32) -> (i32, i32) {
    %c0_i32 = arith.constant 0 : i32
    %c0_i32_0 = arith.constant 0 : i32
    %c0_i32_1 = arith.constant 0 : i32
    return %c0_i32, %c0_i32_0 : i32, i32
  }
  func.func @transform_8(%arg0: i32) -> (i32, i32) {
    %c0_i32 = arith.constant 0 : i32
    %c0_i32_0 = arith.constant 0 : i32
    return %arg0, %c0_i32 : i32, i32
  }
}

</mosaic_0001>

<bundles_post_ra>
// kernel: tpu_custom_call.1
= control target key start
LH: loop header
LB: loop body
LE: loop exit
PB: predicated region body
PF: predicated region fallthrough
CT: control target
= control target key end

     0   :  { %s1678_s27 = smov 0   ;;  %s1983_s0 = inlined_call_operand.vmem [shape: f32[256,16], index: 0, kind: input, shape index: {}]   ;;  %s1984_s1 = inlined_call_operand.vmem [shape: f32[16,128], index: 1, kind: input, shape index: {}]   ;;  %s1985_s2 = inlined_call_operand.vmem [shape: f32[1,128], index: 2, kind: input, shape index: {}]   ;;  %s1986_s3 = inlined_call_operand.vmem [shape: f32[128,128], index: 3, kind: input, shape index: {}]   ;;  %s1987_s4 = inlined_call_operand.vmem [shape: f32[1,128], index: 4, kind: input, shape index: {}]   ;;  %s1988_s5 = inlined_call_operand.vmem [shape: f32[128,16], index: 5, kind: input, shape index: {}]   ;;  %s1989_s6 = inlined_call_operand.vmem [shape: f32[128,16], index: 6, kind: input, shape index: {}]   ;;  %s1990_s7 = inlined_call_operand.vmem [shape: f32[1,16], index: 7, kind: input, shape index: {}]   ;;  %s1991_s8 = inlined_call_operand.vmem [shape: f32[256,16], index: 8, kind: output, shape index: {}]  }
   0x1 LB: > { %s1145_s28 = sadd.s32 4294967295, %s1631_s27   ;;  %p1149_p0 = scmp.ge.s32.totalorder %s1631_s27, 1  ;;  %s1631_s27 = sphi %s1678_s27, %s18_s27  }
   0x2   : > { %p263_p1 = scmp.lt.s32.totalorder %s1631_s27, 3 }
   0x4   : > { %p264_p2 = pnand %p1149_p0, %p263_p1 }
   0x5   : > { %v325_v0 = vld [vmem:[%s1984_s1] sm:$0xff] (!%p264_p2)  ;;  %v326_v1 = vld [vmem:[%s1984_s1 + $0x8] sm:$0xff] (!%p264_p2)  ;;  %s1150_s11 = sshll.u32 (!%p264_p2), %s1145_s28, 4  ;;  %v546_v9 = vld [vmem:[%s1986_s3 + $0x10] sm:$0xff] (!%p264_p2)  ;;  %vm334_vm0 = vcmask (!%p264_p2), 130048  }
   0x6   : > { %267 = sbr.rel (%p264_p2) target bundleno = 700 (0x2bc), region = 52  ;;  %v544_v2 = vld [vmem:[%s1986_s3] sm:$0xff] (!%p264_p2)  ;;  %v1485_v3 = vpack.c.bf16 (!%p264_p2), %v326_v1, %v325_v0  ;;  %p298_p3 = scmp.lt.s32.totalorder (!%p264_p2), %s1150_s11, 31  ;;  %v545_v4 = vld [vmem:[%s1986_s3 + $0x8] sm:$0xff] (!%p264_p2)  ;;  %v547_v10 = vld [vmem:[%s1986_s3 + $0x18] sm:$0xff] (!%p264_p2) }
   0x7   : > { %v744_v5 = vld [vmem:[%s1989_s6] sm:$0xff] (!%p264_p2)  ;;  %v745_v6 = vld [vmem:[%s1989_s6 + $0x8] sm:$0xff] (!%p264_p2)  ;;  %v1489_v7 = vpack.c.bf16 (!%p264_p2), %v545_v4, %v544_v2  ;;  %v1493_v11 = vpack.c.bf16 (!%p264_p2), %v547_v10, %v546_v9  ;;  %v746_v12 = vld [vmem:[%s1989_s6 + $0x10] sm:$0xff] (!%p264_p2) }
   0x8   : > { %v1521_v8 = vpack.c.bf16 (!%p264_p2), %v745_v6, %v744_v5  ;;  %1486 = vmatprep.subr.bf16.mxu0 (!%p264_p2), %v1485_v3  ;;  %v747_v13 = vld [vmem:[%s1989_s6 + $0x18] sm:$0xff] (!%p264_p2)  ;;  %v548_v14 = vld [vmem:[%s1986_s3 + $0x20] sm:$0xff] (!%p264_p2)  ;;  %v549_v15 = vld [vmem:[%s1986_s3 + $0x28] sm:$0xff] (!%p264_p2) }
   0x9   : > { %1488 = vmatpush3.bf16.msra.mxu0 (!%p264_p2), %v1485_v3  ;;  %1490 = vmatprep.subr.bf16.mxu1 (!%p264_p2), %v1489_v7  ;;  %v748_v16 = vld [vmem:[%s1989_s6 + $0x20] sm:$0xff] (!%p264_p2)  ;;  %v1525_v20 = vpack.c.bf16 (!%p264_p2), %v747_v13, %v746_v12  ;;  %v1497_v21 = vpack.c.bf16 (!%p264_p2), %v549_v15, %v548_v14  ;;  %v749_v22 = vld [vmem:[%s1989_s6 + $0x28] sm:$0xff] (!%p264_p2)  ;;  %v550_v23 = vld [vmem:[%s1986_s3 + $0x30] sm:$0xff] (!%p264_p2) }
   0xa   : > { %1522 = vmatprep.subr.bf16.mxu0 (!%p264_p2), %v1521_v8  ;;  %1492 = vmatpush3.bf16.msra.mxu1 (!%p264_p2), %v1489_v7  ;;  %v551_v24 = vld [vmem:[%s1986_s3 + $0x38] sm:$0xff] (!%p264_p2)  ;;  %v1529_v27 = vpack.c.bf16 (!%p264_p2), %v749_v22, %v748_v16  ;;  %v750_v29 = vld [vmem:[%s1989_s6 + $0x30] sm:$0xff] (!%p264_p2)  ;;  %v552_v31 = vld [vmem:[%s1986_s3 + $0x40] sm:$0xff] (!%p264_p2) }
   0xb   : > { %1494 = vmatprep.subr.bf16.mxu1 (!%p264_p2), %v1493_v11  ;;  %v1501_v28 = vpack.c.bf16 (!%p264_p2), %v551_v24, %v550_v23  ;;  %v751_v30 = vld [vmem:[%s1989_s6 + $0x38] sm:$0xff] (!%p264_p2)  ;;  %v553_v32 = vld [vmem:[%s1986_s3 + $0x48] sm:$0xff] (!%p264_p2)  ;;  %v752_v37 = vld [vmem:[%s1989_s6 + $0x40] sm:$0xff] (!%p264_p2) }
   0xc   : > { %v1533_v35 = vpack.c.bf16 (!%p264_p2), %v751_v30, %v750_v29  ;;  %v1505_v36 = vpack.c.bf16 (!%p264_p2), %v553_v32, %v552_v31  ;;  %v753_v38 = vld [vmem:[%s1989_s6 + $0x48] sm:$0xff] (!%p264_p2)  ;;  %v554_v39 = vld [vmem:[%s1986_s3 + $0x50] sm:$0xff] (!%p264_p2)  ;;  %v555_v40 = vld [vmem:[%s1986_s3 + $0x58] sm:$0xff] (!%p264_p2) }
   0xd   : > { %s1993_s11 = smov (!%p298_p3, %s1150_s11), 31  ;;  %v1537_v43 = vpack.c.bf16 %v753_v38, %v752_v37  ;;  %v1509_v44 = vpack.c.bf16 %v555_v40, %v554_v39  ;;  %v754_v45 = vld [vmem:[%s1989_s6 + $0x50] sm:$0xff]  ;;  %v755_v46 = vld [vmem:[%s1989_s6 + $0x58] sm:$0xff]  ;;  %v556_v47 = vld [vmem:[%s1986_s3 + $0x60] sm:$0xff] }
   0xe   : > { %s1151_s12 = sshll.u32 %s1993_s11, 3  ;;  %1496 = vmatpush3.bf16.msra.mxu1 %v1493_v11  ;;  %v557_v48 = vld [vmem:[%s1986_s3 + $0x68] sm:$0xff]  ;;  %v1541_v51 = vpack.c.bf16 %v755_v46, %v754_v45  ;;  %v756_v53 = vld [vmem:[%s1989_s6 + $0x60] sm:$0xff]  ;;  %v558_v61 = vld [vmem:[%s1986_s3 + $0x70] sm:$0xff] }
   0xf   : > { %s1730_s15 = scalar_lea.vmem %s1983_s0, %s1151_s12  ;;  %1498 = vmatprep.subr.bf16.mxu1 %v1497_v21  ;;  %v1513_v52 = vpack.c.bf16 %v557_v48, %v556_v47  ;;  %v757_v54 = vld [vmem:[%s1989_s6 + $0x68] sm:$0xff]  ;;  %v559_v62 = vld [vmem:[%s1986_s3 + $0x78] sm:$0xff]  ;;  %v758_v0 = vld [vmem:[%s1989_s6 + $0x70] sm:$0xff]  ;;  %s1940_s25 = scalar_lea.vmem %s1991_s8, %s1151_s12 }
  0x10   : > { %v309_v17 = vld [vmem:[%s1730_s15] sm:$0xff]  ;;  %v310_v18 = vld [vmem:[%s1730_s15 + $0x8] sm:$0xff]  ;;  %v311_v19 = vld [vmem:[%s1730_s15 + $0x10] sm:$0xff]  ;;  %v1545_v57 = vpack.c.bf16 %v757_v54, %v756_v53  ;;  %v1517_v63 = vpack.c.bf16 %v559_v62, %v558_v61 }
  0x11   : > { %1293 = vmatprep.mubr.msk.f32.mxu0 %vm334_vm0, %v309_v17  ;;  %v312_v25 = vld [vmem:[%s1730_s15 + $0x18] sm:$0xff]  ;;  %v313_v26 = vld [vmem:[%s1730_s15 + $0x20] sm:$0xff]  ;;  %v314_v33 = vld [vmem:[%s1730_s15 + $0x28] sm:$0xff] }
  0x12   : > { %1294 = vmatmul.mubr.msk.f32.vlgmr.msra.gmra.mrb[0].mxu0 %vm334_vm0, %v310_v18  ;;  %1500 = vmatpush3.bf16.msra.mxu1 %v1497_v21  ;;  %v315_v34 = vld [vmem:[%s1730_s15 + $0x30] sm:$0xff]  ;;  %v316_v41 = vld [vmem:[%s1730_s15 + $0x38] sm:$0xff]  ;;  %v317_v42 = vld [vmem:[%s1730_s15 + $0x40] sm:$0xff] }
  0x13   : > { %1296 = vmatprep.mubr.msk.f32.mxu0 %vm334_vm0, %v311_v19  ;;  %1524 = vmatpush3.bf16.msra.mxu0 %v1521_v8  ;;  %v318_v49 = vld [vmem:[%s1730_s15 + $0x48] sm:$0xff]  ;;  %v319_v50 = vld [vmem:[%s1730_s15 + $0x50] sm:$0xff]  ;;  %v320_v55 = vld [vmem:[%s1730_s15 + $0x58] sm:$0xff] }
  0x14   : > { %1526 = vmatprep.subr.bf16.mxu0 %v1525_v20  ;;  %1502 = vmatprep.subr.bf16.mxu1 %v1501_v28  ;;  %v321_v56 = vld [vmem:[%s1730_s15 + $0x60] sm:$0xff]  ;;  %v322_v58 = vld [vmem:[%s1730_s15 + $0x68] sm:$0xff]  ;;  %v323_v59 = vld [vmem:[%s1730_s15 + $0x70] sm:$0xff] }
  0x15   : > { %v324_v60 = vld [vmem:[%s1730_s15 + $0x78] sm:$0xff]  ;;  %v728_v3 = vld [vmem:[%s1988_s5] sm:$0xff]  ;;  %v729_v4 = vld [vmem:[%s1988_s5 + $0x8] sm:$0xff] }
  0x16   : > { %1297 = vmatmul.mubr.msk.f32.gmra.mrb[2].mxu0 %vm334_vm0, %v312_v25  ;;  %1504 = vmatpush3.bf16.msra.mxu1 %v1501_v28  ;;  %v759_v1 = vld [vmem:[%s1989_s6 + $0x78] sm:$0xff]  ;;  %v1553_v5 = vpack.c.bf16 %v729_v4, %v728_v3  ;;  %v1839_v6 = vld [vmem:[%s1985_s2] ss:$0 sm:$0xff]  ;;  %v730_v11 = vld [vmem:[%s1988_s5 + $0x10] sm:$0xff] }
  0x17   : > { %1299 = vmatprep.mubr.msk.f32.mxu0 %vm334_vm0, %v313_v26  ;;  %1528 = vmatpush3.bf16.msra.mxu0 %v1525_v20  ;;  %v1549_v2 = vpack.c.bf16 %v759_v1, %v758_v0  ;;  %v731_v12 = vld [vmem:[%s1988_s5 + $0x18] sm:$0xff]  ;;  %v732_v20 = vld [vmem:[%s1988_s5 + $0x20] sm:$0xff]  ;;  %v733_v21 = vld [vmem:[%s1988_s5 + $0x28] sm:$0xff] }
  0x18   : > { %1530 = vmatprep.subr.bf16.mxu0 %v1529_v27  ;;  %1506 = vmatprep.subr.bf16.mxu1 %v1505_v36  ;;  %v1557_v18 = vpack.c.bf16 %v731_v12, %v730_v11  ;;  %v734_v29 = vld [vmem:[%s1988_s5 + $0x30] sm:$0xff]  ;;  %v735_v30 = vld [vmem:[%s1988_s5 + $0x38] sm:$0xff]  ;;  %v736_v38 = vld [vmem:[%s1988_s5 + $0x40] sm:$0xff] }
  0x19   : > { %v737_v39 = vld [vmem:[%s1988_s5 + $0x48] sm:$0xff]  ;;  %v738_v47 = vld [vmem:[%s1988_s5 + $0x50] sm:$0xff]  ;;  %v739_v48 = vld [vmem:[%s1988_s5 + $0x58] sm:$0xff] }
  0x1a   : > { %1300 = vmatmul.mubr.msk.f32.gmra.mrb[4].mxu0 %vm334_vm0, %v314_v33  ;;  %1508 = vmatpush3.bf16.msra.mxu1 %v1505_v36  ;;  %v1565_v36 = vpack.c.bf16 %v735_v30, %v734_v29  ;;  %v1569_v45 = vpack.c.bf16 %v737_v39, %v736_v38  ;;  %v1573_v54 = vpack.c.bf16 %v739_v48, %v738_v47  ;;  %v1902_v12 = vld [vmem:[%s1987_s4] ss:$0 sm:$0xff] }
  0x1b   : > { %1302 = vmatprep.mubr.msk.f32.mxu0 %vm334_vm0, %v315_v34  ;;  %1532 = vmatpush3.bf16.msra.mxu0 %v1529_v27  ;;  %v1561_v27 = vpack.c.bf16 %v733_v21, %v732_v20 }
  0x1c   : > { %1534 = vmatprep.subr.bf16.mxu0 %v1533_v35  ;;  %1510 = vmatprep.subr.bf16.mxu1 %v1509_v44 }
  0x1e   : > { %1303 = vmatmul.mubr.msk.f32.gmra.mrb[6].mxu0 %vm334_vm0, %v316_v41  ;;  %1512 = vmatpush3.bf16.msra.mxu1 %v1509_v44 }
  0x1f   : > { %1305 = vmatprep.mubr.msk.f32.mxu0 %vm334_vm0, %v317_v42  ;;  %1536 = vmatpush3.bf16.msra.mxu0 %v1533_v35 }
  0x20   : > { %1538 = vmatprep.subr.bf16.mxu0 %v1537_v43  ;;  %1514 = vmatprep.subr.bf16.mxu1 %v1513_v52 }
  0x22   : > { %1306 = vmatmul.mubr.msk.f32.gmra.mrb[8].mxu0 %vm334_vm0, %v318_v49  ;;  %1516 = vmatpush3.bf16.msra.mxu1 %v1513_v52 }
  0x23   : > { %1308 = vmatprep.mubr.msk.f32.mxu0 %vm334_vm0, %v319_v50  ;;  %1540 = vmatpush3.bf16.msra.mxu0 %v1537_v43 }
  0x24   : > { %1542 = vmatprep.subr.bf16.mxu0 %v1541_v51  ;;  %1518 = vmatprep.subr.bf16.mxu1 %v1517_v63 }
  0x26   : > { %1309 = vmatmul.mubr.msk.f32.gmra.mrb[10].mxu0 %vm334_vm0, %v320_v55  ;;  %1520 = vmatpush3.bf16.msra.mxu1 %v1517_v63 }
  0x27   : > { %1311 = vmatprep.mubr.msk.f32.mxu0 %vm334_vm0, %v321_v56  ;;  %1544 = vmatpush3.bf16.msra.mxu0 %v1541_v51  ;;  %v740_v56 = vld [vmem:[%s1988_s5 + $0x60] sm:$0xff] }
  0x28   : > { %1546 = vmatprep.subr.bf16.mxu0 %v1545_v57  ;;  %1585 = vmatprep.subr.bf16.mxu1 %v1553_v5 }
  0x2a   : > { %1312 = vmatmul.mubr.msk.f32.gmra.mrb[12].mxu0 %vm334_vm0, %v322_v58 }
  0x2b   : > { %1314 = vmatprep.mubr.msk.f32.mxu0 %vm334_vm0, %v323_v59  ;;  %1548 = vmatpush3.bf16.msra.mxu0 %v1545_v57  ;;  %v741_v57 = vld [vmem:[%s1988_s5 + $0x68] sm:$0xff] }
  0x2c   : > { %1550 = vmatprep.subr.bf16.mxu0 %v1549_v2  ;;  %v1577_v63 = vpack.c.bf16 %v741_v57, %v740_v56 }
  0x2e   : > { %1315 = vmatmul.mubr.msk.f32.gmra.mrb[14].mxu0 %vm334_vm0, %v324_v60 }
  0x2f   : > { %1552 = vmatpush3.bf16.msra.mxu0 %v1549_v2 }
  0x30   : > { %1554 = vmatprep.subr.bf16.mxu0 %v1553_v5 }
  0xe5   : > { %v1295_v7 = vpop.f32.mrb[0].mxu0 }
  0xe6   : > { %v455_v8 = vadd.f32 %v1295_v7, %v1839_v6  ;;  %v449_v9 = vpop.f32.mrb[1].mxu0 }
  0xe7   : > { %v450_v10 = vadd.f32 %v1839_v6, %v449_v9 }
  0xe8   : > { %v529_v15 = vmax.f32 %v455_v8, 0.0 }
  0xe9   : > { %v528_v13 = vmax.f32 %v450_v10, 0.0  ;;  %v1298_v14 = vpop.f32.mrb[2].mxu0  ;;  %v742_v10 = vld [vmem:[%s1988_s5 + $0x70] sm:$0xff] }
  0xea   : > { %v465_v16 = vadd.f32 %v1298_v14, %v1839_v6  ;;  %v459_v17 = vpop.f32.mrb[3].mxu0 }
  0xeb   : > { %v460_v19 = vadd.f32 %v1839_v6, %v459_v17  ;;  %1349 = vmatprep.mubr.f32.mxu1 %v528_v13  ;;  %1405 = vmatprep.mubr.f32.mxu0 %v528_v13 }
  0xec   : > { %1350 = vmatmul.mubr.f32.vlgmr.msra.gmra.mrb[0].mxu1 %v529_v15  ;;  %1406 = vmatmul.mubr.f32.vlgmr.msra.gmra.mrb[16].mxu0 %v529_v15  ;;  %v531_v24 = vmax.f32 %v465_v16, 0.0 }
  0xed   : > { %v530_v22 = vmax.f32 %v460_v19, 0.0  ;;  %v1301_v23 = vpop.f32.mrb[4].mxu0  ;;  %1556 = vmatpush3.bf16.msra.mxu0 %v1553_v5  ;;  %1593 = vmatpush3.bf16.msra.mxu1 %v1553_v5 }
  0xee   : > { %v475_v25 = vadd.f32 %v1301_v23, %v1839_v6  ;;  %v469_v26 = vpop.f32.mrb[5].mxu0  ;;  %1558 = vmatprep.subr.bf16.mxu0 %v1557_v18  ;;  %1586 = vmatprep.subr.bf16.mxu1 %v1557_v18 }
  0xef   : > { %v470_v28 = vadd.f32 %v1839_v6, %v469_v26  ;;  %1352 = vmatprep.mubr.f32.mxu1 %v530_v22  ;;  %1408 = vmatprep.mubr.f32.mxu0 %v530_v22 }
  0xf0   : > { %1353 = vmatmul.mubr.f32.gmra.mrb[2].mxu1 %v531_v24  ;;  %1409 = vmatmul.mubr.f32.gmra.mrb[18].mxu0 %v531_v24  ;;  %v533_v33 = vmax.f32 %v475_v25, 0.0 }
  0xf1   : > { %v532_v31 = vmax.f32 %v470_v28, 0.0  ;;  %v1304_v32 = vpop.f32.mrb[6].mxu0  ;;  %1560 = vmatpush3.bf16.msra.mxu0 %v1557_v18  ;;  %1594 = vmatpush3.bf16.msra.mxu1 %v1557_v18 }
  0xf2   : > { %v485_v34 = vadd.f32 %v1304_v32, %v1839_v6  ;;  %v479_v35 = vpop.f32.mrb[7].mxu0  ;;  %1562 = vmatprep.subr.bf16.mxu0 %v1561_v27  ;;  %1587 = vmatprep.subr.bf16.mxu1 %v1561_v27 }
  0xf3   : > { %v480_v37 = vadd.f32 %v1839_v6, %v479_v35  ;;  %1355 = vmatprep.mubr.f32.mxu1 %v532_v31  ;;  %1411 = vmatprep.mubr.f32.mxu0 %v532_v31 }
  0xf4   : > { %1356 = vmatmul.mubr.f32.gmra.mrb[4].mxu1 %v533_v33  ;;  %1412 = vmatmul.mubr.f32.gmra.mrb[20].mxu0 %v533_v33  ;;  %v535_v42 = vmax.f32 %v485_v34, 0.0 }
  0xf5   : > { %v534_v40 = vmax.f32 %v480_v37, 0.0  ;;  %v1307_v41 = vpop.f32.mrb[8].mxu0  ;;  %1564 = vmatpush3.bf16.msra.mxu0 %v1561_v27  ;;  %1595 = vmatpush3.bf16.msra.mxu1 %v1561_v27 }
  0xf6   : > { %v495_v43 = vadd.f32 %v1307_v41, %v1839_v6  ;;  %v489_v44 = vpop.f32.mrb[9].mxu0  ;;  %1566 = vmatprep.subr.bf16.mxu0 %v1565_v36  ;;  %1588 = vmatprep.subr.bf16.mxu1 %v1565_v36 }
  0xf7   : > { %v490_v46 = vadd.f32 %v1839_v6, %v489_v44  ;;  %1358 = vmatprep.mubr.f32.mxu1 %v534_v40  ;;  %1414 = vmatprep.mubr.f32.mxu0 %v534_v40 }
  0xf8   : > { %1359 = vmatmul.mubr.f32.gmra.mrb[6].mxu1 %v535_v42  ;;  %1415 = vmatmul.mubr.f32.gmra.mrb[22].mxu0 %v535_v42  ;;  %v537_v51 = vmax.f32 %v495_v43, 0.0 }
  0xf9   : > { %v536_v49 = vmax.f32 %v490_v46, 0.0  ;;  %v1310_v50 = vpop.f32.mrb[10].mxu0  ;;  %1568 = vmatpush3.bf16.msra.mxu0 %v1565_v36  ;;  %1596 = vmatpush3.bf16.msra.mxu1 %v1565_v36 }
  0xfa   : > { %v505_v52 = vadd.f32 %v1310_v50, %v1839_v6  ;;  %v499_v53 = vpop.f32.mrb[11].mxu0  ;;  %1570 = vmatprep.subr.bf16.mxu0 %v1569_v45  ;;  %1589 = vmatprep.subr.bf16.mxu1 %v1569_v45 }
  0xfb   : > { %v500_v55 = vadd.f32 %v1839_v6, %v499_v53  ;;  %1361 = vmatprep.mubr.f32.mxu1 %v536_v49  ;;  %1417 = vmatprep.mubr.f32.mxu0 %v536_v49 }
  0xfc   : > { %1362 = vmatmul.mubr.f32.gmra.mrb[8].mxu1 %v537_v51  ;;  %1418 = vmatmul.mubr.f32.gmra.mrb[24].mxu0 %v537_v51  ;;  %v539_v60 = vmax.f32 %v505_v52, 0.0 }
  0xfd   : > { %v538_v58 = vmax.f32 %v500_v55, 0.0  ;;  %v1313_v59 = vpop.f32.mrb[12].mxu0  ;;  %1572 = vmatpush3.bf16.msra.mxu0 %v1569_v45  ;;  %1597 = vmatpush3.bf16.msra.mxu1 %v1569_v45 }
  0xfe   : > { %v515_v61 = vadd.f32 %v1313_v59, %v1839_v6  ;;  %v509_v62 = vpop.f32.mrb[13].mxu0  ;;  %1574 = vmatprep.subr.bf16.mxu0 %v1573_v54  ;;  %1590 = vmatprep.subr.bf16.mxu1 %v1573_v54 }
  0xff   : > { %v510_v0 = vadd.f32 %v1839_v6, %v509_v62  ;;  %1364 = vmatprep.mubr.f32.mxu1 %v538_v58  ;;  %1420 = vmatprep.mubr.f32.mxu0 %v538_v58 }
 0x100   : > { %1365 = vmatmul.mubr.f32.gmra.mrb[10].mxu1 %v539_v60  ;;  %1421 = vmatmul.mubr.f32.gmra.mrb[26].mxu0 %v539_v60  ;;  %v541_v3 = vmax.f32 %v515_v61, 0.0 }
 0x101   : > { %v540_v1 = vmax.f32 %v510_v0, 0.0  ;;  %v1316_v2 = vpop.f32.mrb[14].mxu0  ;;  %1576 = vmatpush3.bf16.msra.mxu0 %v1573_v54  ;;  %1598 = vmatpush3.bf16.msra.mxu1 %v1573_v54 }
 0x102   : > { %v525_v4 = vadd.f32 %v1316_v2, %v1839_v6  ;;  %v519_v5 = vpop.f32.mrb[15].mxu0  ;;  %1578 = vmatprep.subr.bf16.mxu0 %v1577_v63  ;;  %1591 = vmatprep.subr.bf16.mxu1 %v1577_v63 }
 0x103   : > { %v520_v7 = vadd.f32 %v1839_v6, %v519_v5  ;;  %1367 = vmatprep.mubr.f32.mxu1 %v540_v1  ;;  %1423 = vmatprep.mubr.f32.mxu0 %v540_v1  ;;  %v743_v6 = vld [vmem:[%s1988_s5 + $0x78] sm:$0xff]  ;;  %v1172_v5 = vld [vmem:[%s1990_s7] ss:$0 sm:$0xff] }
 0x104   : > { %1368 = vmatmul.mubr.f32.gmra.mrb[12].mxu1 %v541_v3  ;;  %1424 = vmatmul.mubr.f32.gmra.mrb[28].mxu0 %v541_v3  ;;  %v543_v9 = vmax.f32 %v525_v4, 0.0  ;;  %v1581_v11 = vpack.c.bf16 %v743_v6, %v742_v10 }
 0x105   : > { %v542_v8 = vmax.f32 %v520_v7, 0.0  ;;  %1580 = vmatpush3.bf16.msra.mxu0 %v1577_v63  ;;  %1599 = vmatpush3.bf16.msra.mxu1 %v1577_v63 }
 0x106   : > { %1582 = vmatprep.subr.bf16.mxu0 %v1581_v11  ;;  %1592 = vmatprep.subr.bf16.mxu1 %v1581_v11 }
 0x107   : > { %1370 = vmatprep.mubr.f32.mxu1 %v542_v8  ;;  %1426 = vmatprep.mubr.f32.mxu0 %v542_v8 }
 0x108   : > { %1371 = vmatmul.mubr.f32.gmra.mrb[14].mxu1 %v543_v9  ;;  %1427 = vmatmul.mubr.f32.gmra.mrb[30].mxu0 %v543_v9 }
 0x109   : > { %1584 = vmatpush3.bf16.msra.mxu0 %v1581_v11  ;;  %1600 = vmatpush3.bf16.msra.mxu1 %v1581_v11 }
 0x1bf   : > { %v1351_v13 = vpop.f32.mrb[0].mxu1 }
 0x1c0   : > { %v639_v14 = vadd.f32 %v1351_v13, %v1902_v12  ;;  %v633_v15 = vpop.f32.mrb[1].mxu1 }
 0x1c1   : > { %v634_v16 = vadd.f32 %v1902_v12, %v633_v15 }
 0x1c2   : > { %v713_v19 = vmax.f32 %v639_v14, 0.0 }
 0x1c3   : > { %v712_v17 = vmax.f32 %v634_v16, 0.0  ;;  %v1354_v18 = vpop.f32.mrb[2].mxu1 }
 0x1c4   : > { %v649_v20 = vadd.f32 %v1354_v18, %v1902_v12  ;;  %v643_v21 = vpop.f32.mrb[3].mxu1 }
 0x1c5   : > { %v644_v22 = vadd.f32 %v1902_v12, %v643_v21  ;;  %1461 = vmatprep.mubr.f32.mxu0 %v712_v17 }
 0x1c6   : > { %1462 = vmatmul.mubr.f32.vlgmr.msra.gmra.mrb[16].mxu0 %v713_v19  ;;  %v715_v25 = vmax.f32 %v649_v20, 0.0 }
 0x1c7   : > { %v714_v23 = vmax.f32 %v644_v22, 0.0  ;;  %v1357_v24 = vpop.f32.mrb[4].mxu1 }
 0x1c8   : > { %v659_v26 = vadd.f32 %v1357_v24, %v1902_v12  ;;  %v653_v27 = vpop.f32.mrb[5].mxu1 }
 0x1c9   : > { %v654_v28 = vadd.f32 %v1902_v12, %v653_v27  ;;  %1464 = vmatprep.mubr.f32.mxu0 %v714_v23 }
 0x1ca   : > { %1465 = vmatmul.mubr.f32.gmra.mrb[18].mxu0 %v715_v25  ;;  %v717_v31 = vmax.f32 %v659_v26, 0.0 }
 0x1cb   : > { %v716_v29 = vmax.f32 %v654_v28, 0.0  ;;  %v1360_v30 = vpop.f32.mrb[6].mxu1 }
 0x1cc   : > { %v669_v32 = vadd.f32 %v1360_v30, %v1902_v12  ;;  %v663_v33 = vpop.f32.mrb[7].mxu1 }
 0x1cd   : > { %v664_v34 = vadd.f32 %v1902_v12, %v663_v33  ;;  %1467 = vmatprep.mubr.f32.mxu0 %v716_v29 }
 0x1ce   : > { %1468 = vmatmul.mubr.f32.gmra.mrb[20].mxu0 %v717_v31  ;;  %v719_v38 = vmax.f32 %v669_v32, 0.0 }
 0x1cf   : > { %v718_v35 = vmax.f32 %v664_v34, 0.0  ;;  %v1363_v36 = vpop.f32.mrb[8].mxu1  ;;  %v1912_v37 = vpop.f32.mrb[24].mxu0 }
 0x1d0   : > { %v679_v39 = vadd.f32 %v1363_v36, %v1902_v12  ;;  %v673_v40 = vpop.f32.mrb[9].mxu1  ;;  %v1915_v41 = vpop.f32.mrb[25].mxu0 }
 0x1d1   : > { %v674_v42 = vadd.f32 %v1902_v12, %v673_v40  ;;  %1470 = vmatprep.mubr.f32.mxu0 %v718_v35 }
 0x1d2   : > { %1471 = vmatmul.mubr.f32.gmra.mrb[22].mxu0 %v719_v38  ;;  %v721_v46 = vmax.f32 %v679_v39, 0.0 }
 0x1d3   : > { %v720_v43 = vmax.f32 %v674_v42, 0.0  ;;  %v1366_v44 = vpop.f32.mrb[10].mxu1  ;;  %v1918_v45 = vpop.f32.mrb[26].mxu0 }
 0x1d4   : > { %v689_v47 = vadd.f32 %v1366_v44, %v1902_v12  ;;  %v683_v48 = vpop.f32.mrb[11].mxu1  ;;  %v1921_v49 = vpop.f32.mrb[27].mxu0 }
 0x1d5   : > { %v684_v50 = vadd.f32 %v1902_v12, %v683_v48  ;;  %1473 = vmatprep.mubr.f32.mxu1 %v720_v43 }
 0x1d6   : > { %1474 = vmatmul.mubr.f32.vlgmr.msra.gmra.mrb[16].mxu1 %v721_v46  ;;  %v723_v54 = vmax.f32 %v689_v47, 0.0 }
 0x1d7   : > { %v722_v51 = vmax.f32 %v684_v50, 0.0  ;;  %v1369_v52 = vpop.f32.mrb[12].mxu1  ;;  %v1924_v53 = vpop.f32.mrb[28].mxu0 }
 0x1d8   : > { %v699_v55 = vadd.f32 %v1369_v52, %v1902_v12  ;;  %v693_v56 = vpop.f32.mrb[13].mxu1  ;;  %v1927_v57 = vpop.f32.mrb[29].mxu0 }
 0x1d9   : > { %v694_v58 = vadd.f32 %v1902_v12, %v693_v56  ;;  %1476 = vmatprep.mubr.f32.mxu1 %v722_v51 }
 0x1da   : > { %1477 = vmatmul.mubr.f32.gmra.mrb[18].mxu1 %v723_v54  ;;  %v725_v62 = vmax.f32 %v699_v55, 0.0 }
 0x1db   : > { %v724_v59 = vmax.f32 %v694_v58, 0.0  ;;  %v1372_v60 = vpop.f32.mrb[14].mxu1  ;;  %v1428_v61 = vpop.f32.mrb[30].mxu0 }
 0x1dc   : > { %v709_v63 = vadd.f32 %v1372_v60, %v1902_v12  ;;  %v703_v0 = vpop.f32.mrb[15].mxu1  ;;  %v896_v1 = vpop.f32.mrb[31].mxu0 }
 0x1dd   : > { %v704_v2 = vadd.f32 %v1902_v12, %v703_v0  ;;  %1479 = vmatprep.mubr.f32.mxu1 %v724_v59 }
 0x1de   : > { %1480 = vmatmul.mubr.f32.gmra.mrb[20].mxu1 %v725_v62  ;;  %v727_v4 = vmax.f32 %v709_v63, 0.0 }
 0x1df   : > { %v726_v3 = vmax.f32 %v704_v2, 0.0 }
 0x1e1   : > { %1482 = vmatprep.mubr.f32.mxu1 %v726_v3 }
 0x1e2   : > { %1483 = vmatmul.mubr.f32.gmra.mrb[22].mxu1 %v727_v4 }
 0x299   : > { %v1463_v7 = vpop.f32.mrb[16].mxu0 }
 0x29a   : > { %v1058_v8 = vadd.f32 %v1463_v7, %v1172_v5  ;;  %v971_v9 = vpop.f32.mrb[17].mxu0 }
 0x29b   : > { %v1057_v10 = vadd.f32 %v1172_v5, %v971_v9 }
 0x29c   : > { %1074 = vst.msk [vmem:[%s1940_s25 + $0x8] sm:$0xff] %vm334_vm0, %v1058_v8 }
 0x29d   : > { %1073 = vst.msk [vmem:[%s1940_s25] sm:$0xff] %vm334_vm0, %v1057_v10  ;;  %v1466_v6 = vpop.f32.mrb[18].mxu0 }
 0x29e   : > { %v1060_v11 = vadd.f32 %v1466_v6, %v1172_v5  ;;  %v981_v12 = vpop.f32.mrb[19].mxu0 }
 0x29f   : > { %v1059_v13 = vadd.f32 %v1172_v5, %v981_v12 }
 0x2a0   : > { %1076 = vst.msk [vmem:[%s1940_s25 + $0x18] sm:$0xff] %vm334_vm0, %v1060_v11 }
 0x2a1   : > { %1075 = vst.msk [vmem:[%s1940_s25 + $0x10] sm:$0xff] %vm334_vm0, %v1059_v13  ;;  %v1469_v14 = vpop.f32.mrb[20].mxu0 }
 0x2a2   : > { %v1062_v15 = vadd.f32 %v1469_v14, %v1172_v5  ;;  %v991_v16 = vpop.f32.mrb[21].mxu0 }
 0x2a3   : > { %v1061_v17 = vadd.f32 %v1172_v5, %v991_v16 }
 0x2a4   : > { %1078 = vst.msk [vmem:[%s1940_s25 + $0x28] sm:$0xff] %vm334_vm0, %v1062_v15 }
 0x2a5   : > { %1077 = vst.msk [vmem:[%s1940_s25 + $0x20] sm:$0xff] %vm334_vm0, %v1061_v17  ;;  %v1472_v18 = vpop.f32.mrb[22].mxu0 }
 0x2a6   : > { %v1064_v19 = vadd.f32 %v1472_v18, %v1172_v5  ;;  %v1001_v20 = vpop.f32.mrb[23].mxu0 }
 0x2a7   : > { %v1063_v21 = vadd.f32 %v1172_v5, %v1001_v20 }
 0x2a8   : > { %1080 = vst.msk [vmem:[%s1940_s25 + $0x38] sm:$0xff] %vm334_vm0, %v1064_v19 }
 0x2a9   : > { %1079 = vst.msk [vmem:[%s1940_s25 + $0x30] sm:$0xff] %vm334_vm0, %v1063_v21  ;;  %v1475_v22 = vpop.f32.mrb[16].mxu1 }
 0x2aa   : > { %v1017_v23 = vadd.f32 %v1475_v22, %v1912_v37  ;;  %v1011_v24 = vpop.f32.mrb[17].mxu1 }
 0x2ab   : > { %v1012_v25 = vadd.f32 %v1011_v24, %v1915_v41 }
 0x2ac   : > { %v1066_v26 = vadd.f32 %v1172_v5, %v1017_v23 }
 0x2ad   : > { %v1065_v27 = vadd.f32 %v1172_v5, %v1012_v25  ;;  %v1478_v28 = vpop.f32.mrb[18].mxu1 }
 0x2ae   : > { %1082 = vst.msk [vmem:[%s1940_s25 + $0x48] sm:$0xff] %vm334_vm0, %v1066_v26  ;;  %v1027_v29 = vadd.f32 %v1478_v28, %v1918_v45  ;;  %v1021_v30 = vpop.f32.mrb[19].mxu1 }
 0x2af   : > { %1081 = vst.msk [vmem:[%s1940_s25 + $0x40] sm:$0xff] %vm334_vm0, %v1065_v27  ;;  %v1022_v31 = vadd.f32 %v1021_v30, %v1921_v49 }
 0x2b0   : > { %v1068_v32 = vadd.f32 %v1172_v5, %v1027_v29 }
 0x2b1   : > { %v1067_v33 = vadd.f32 %v1172_v5, %v1022_v31  ;;  %v1481_v34 = vpop.f32.mrb[20].mxu1 }
 0x2b2   : > { %1084 = vst.msk [vmem:[%s1940_s25 + $0x58] sm:$0xff] %vm334_vm0, %v1068_v32  ;;  %v1037_v35 = vadd.f32 %v1481_v34, %v1924_v53  ;;  %v1031_v36 = vpop.f32.mrb[21].mxu1 }
 0x2b3   : > { %1083 = vst.msk [vmem:[%s1940_s25 + $0x50] sm:$0xff] %vm334_vm0, %v1067_v33  ;;  %v1032_v37 = vadd.f32 %v1031_v36, %v1927_v57 }
 0x2b4   : > { %v1070_v38 = vadd.f32 %v1172_v5, %v1037_v35 }
 0x2b5   : > { %v1069_v39 = vadd.f32 %v1172_v5, %v1032_v37  ;;  %v1484_v40 = vpop.f32.mrb[22].mxu1 }
 0x2b6   : > { %1086 = vst.msk [vmem:[%s1940_s25 + $0x68] sm:$0xff] %vm334_vm0, %v1070_v38  ;;  %v1047_v41 = vadd.f32 %v1484_v40, %v1428_v61  ;;  %v1041_v42 = vpop.f32.mrb[23].mxu1 }
 0x2b7   : > { %1085 = vst.msk [vmem:[%s1940_s25 + $0x60] sm:$0xff] %vm334_vm0, %v1069_v39  ;;  %v1042_v43 = vadd.f32 %v1041_v42, %v896_v1 }
 0x2b8   : > { %v1072_v44 = vadd.f32 %v1172_v5, %v1047_v41 }
 0x2b9   : > { %v1071_v45 = vadd.f32 %v1172_v5, %v1042_v43 }
 0x2ba   : > { %1088 = vst.msk [vmem:[%s1940_s25 + $0x78] sm:$0xff] %vm334_vm0, %v1072_v44 }
 0x2bb   : > { %1087 = vst.msk [vmem:[%s1940_s25 + $0x70] sm:$0xff] %vm334_vm0, %v1071_v45 }
 0x2bc PF: > { %s18_s27 = sadd.s32 1, %s1631_s27  }
 0x2bd   : > { %p15_p4 = scmp.ge.s32.totalorder %s18_s27, 4  }
 0x2bf   :  { %17 = sbr.rel (!%p15_p4) target bundleno = 1 (0x1), region = 82 }

</bundles_post_ra>
